<compile_context>
chip_gen: v7x
topology: tpu7x:2x2x1
jax: 0.10.0
libtpu: 0.0.40
codegen_flags: <defaults>
</compile_context>

<pallas_src>
import jax
import jax.numpy as jnp
from jax.experimental import pallas as pl
from jax.experimental.pallas import tpu as pltpu


def _u_quant_fea_kernel(fea_ref, params_ref, out_ref):
    """Per-row uniform quantization on one (TN, TD) tile.

    params_ref is (TN, 2): column 0 = gama, column 1 = bit.
    """
    fea = fea_ref[...].astype(jnp.float32)             # (TN, TD)
    gama = params_ref[:, 0:1].astype(jnp.float32)      # (TN, 1)
    bit = params_ref[:, 1:2].astype(jnp.float32)       # (TN, 1)

    alpha = jnp.abs(gama)                               # per-row step size
    b = jnp.clip(jnp.round(bit), 1.0, 32.0)             # effective bit-width
    half_range = jnp.exp2(b - 1.0)                      # 2^(b-1)
    qp = half_range - 1.0
    qn = -half_range

    # Per-row reciprocal on the tiny (TN,1) column, then a VALU multiply on the
    # full tile (exact reciprocal; do NOT use approx -- rounding-boundary safety).
    inv_alpha = 1.0 / alpha
    x = jnp.clip(jnp.round(fea * inv_alpha), qn, qp)
    out_ref[...] = (x * alpha).astype(out_ref.dtype)


def u_quant_fea_forward(
    fea,
    gama,
    bit,
    *,
    quant_fea=True,
    block_rows=None,
    block_cols=None,
    target_tile_bytes=4 * 1024 * 1024,   # fea tile budget; ~16 MiB total w/ dbl-buffered in+out
    vmem_limit_bytes=48 * 1024 * 1024,   # > v5e/v6e default scoped limits, < v7x 64 MiB physical
):
    """JAX/Pallas equivalent of u_quant_fea.forward."""
    if not quant_fea:
        return fea

    n, d = fea.shape
    gama = jnp.reshape(gama, (n, 1)).astype(jnp.float32)
    bit = jnp.reshape(bit, (n, 1)).astype(jnp.float32)
    # Pack the two per-row parameters into one (N, 2) side input: one small DMA
    # per grid step instead of two.
    params = jnp.concatenate([gama, bit], axis=1)       # (N, 2) f32

    itemsize = jnp.dtype(fea.dtype).itemsize
    # Sublane packing: f32 -> 8-row multiple, bf16 -> 16, int8/fp8 -> 32.
    row_mult = 8 if itemsize >= 4 else (16 if itemsize == 2 else 32)

    # Column tiling: full width unless D is very wide (keeps per-tile VMEM
    # bounded while staying lane-dense, i.e. a multiple of 128).
    if block_cols is None:
        if d <= 2048 or d % 128 != 0:
            block_cols = d
        else:
            block_cols = 1024

    # Row tiling: largest row_mult-aligned tile within the VMEM budget.
    if block_rows is None:
        rows_budget = max(
            row_mult,
            (target_tile_bytes // (block_cols * itemsize)) // row_mult * row_mult,
        )
        block_rows = n if n <= rows_budget else int(rows_budget)

    grid = (pl.cdiv(n, block_rows), pl.cdiv(d, block_cols))

    return pl.pallas_call(
        _u_quant_fea_kernel,
        out_shape=jax.ShapeDtypeStruct((n, d), fea.dtype),
        grid=grid,
        in_specs=[
            pl.BlockSpec((block_rows, block_cols), lambda i, j: (i, j)),
            pl.BlockSpec((block_rows, 2), lambda i, j: (i, 0)),
        ],
        out_specs=pl.BlockSpec((block_rows, block_cols), lambda i, j: (i, j)),
        compiler_params=pltpu.CompilerParams(
            dimension_semantics=("parallel", "parallel"),
            vmem_limit_bytes=vmem_limit_bytes,
        ),
    )(fea, params)


def init_u_quant_fea_params(key, dim_fea, bit_init, gama_init=0.001, gama_std=0.001):
    """Deterministic re-implementation of u_quant_fea.__init__ parameter setup."""
    gama = gama_init + gama_std * jax.random.normal(key, (dim_fea, 1), dtype=jnp.float32)
    gama = jnp.abs(gama)
    bit = jnp.full((dim_fea, 1), float(bit_init), dtype=jnp.float32)
    return gama, bit


def _u_quant_fea_ref(fea, gama, bit):
    """Pure-JAX reference of the same quantization semantics."""
    alpha = jnp.abs(gama)
    b = jnp.clip(jnp.round(bit), 1.0, 32.0)
    half = jnp.exp2(b - 1.0)
    return jnp.clip(jnp.round(fea / alpha), -half, half - 1.0) * alpha


if __name__ == "__main__":
    key = jax.random.PRNGKey(0)
    k1, k2, k3, k4 = jax.random.split(key, 4)

    # Case 1: small graph-feature matrix, N not a multiple of 8 (exercises the
    # full-extent row block path), auto-chosen tile (single grid step).
    n1, d1, bit_init = 100, 128, 4
    fea1 = jax.random.normal(k1, (n1, d1), dtype=jnp.float32) * 0.1
    gama1, bit1 = init_u_quant_fea_params(k2, n1, bit_init)

    out1 = jax.block_until_ready(u_quant_fea_forward(fea1, gama1, bit1))
    ref1 = _u_quant_fea_ref(fea1, gama1, bit1)
    assert jnp.allclose(out1, ref1, atol=1e-5, rtol=1e-5), "case 1 mismatch"

    # Case 2: forced multi-block 2-D grid with a partial (masked) row tail.
    n2, d2 = 200, 256
    fea2 = jax.random.normal(k3, (n2, d2), dtype=jnp.float32) * 0.1
    gama2, bit2 = init_u_quant_fea_params(k4, n2, 8)

    out2 = jax.block_until_ready(
        u_quant_fea_forward(fea2, gama2, bit2, block_rows=64, block_cols=128)
    )
    ref2 = _u_quant_fea_ref(fea2, gama2, bit2)
    assert jnp.allclose(out2, ref2, atol=1e-5, rtol=1e-5), "case 2 mismatch"

    # quant_fea=False passthrough matches the module's early-out.
    out3 = u_quant_fea_forward(fea1, gama1, bit1, quant_fea=False)
    assert out3 is fea1

    print("KERNEL_OK")
</pallas_src>

<mosaic_0001>
module attributes {stable_mosaic.version = 11 : i64} {
  func.func @_u_quant_fea_kernel(%arg0: i32, %arg1: i32, %arg2: memref<100x128xf32, #tpu.memory_space<vmem>>, %arg3: memref<100x2xf32, #tpu.memory_space<vmem>>, %arg4: memref<100x128xf32, #tpu.memory_space<vmem>>) attributes {dimension_semantics = [#tpu.dimension_semantics<parallel>, #tpu.dimension_semantics<parallel>], iteration_bounds = array<i64: 1, 1>, scalar_prefetch = 0 : i64, scratch_operands = 0 : i64, tpu.core_type = #tpu.core_type<tc>, window_params = [{transform_indices = @transform_0, window_bounds = array<i64: 100, 128>}, {transform_indices = @transform_1, window_bounds = array<i64: 100, 2>}, {transform_indices = @transform_2, window_bounds = array<i64: 100, 128>}]} {
    %c0 = arith.constant 0 : index
    %c0_0 = arith.constant 0 : index
    %0 = vector.load %arg2[%c0, %c0_0] : memref<100x128xf32, #tpu.memory_space<vmem>>, vector<100x128xf32>
    %c0_1 = arith.constant 0 : index
    %c0_2 = arith.constant 0 : index
    %1 = vector.load %arg3[%c0_1, %c0_2] : memref<100x2xf32, #tpu.memory_space<vmem>>, vector<100x1xf32>
    %c0_3 = arith.constant 0 : index
    %c1 = arith.constant 1 : index
    %2 = vector.load %arg3[%c0_3, %c1] : memref<100x2xf32, #tpu.memory_space<vmem>>, vector<100x1xf32>
    %3 = math.absf %1 : vector<100x1xf32>
    %4 = math.roundeven %2 : vector<100x1xf32>
    %cst = arith.constant 1.000000e+00 : f32
    %cst_4 = arith.constant 3.200000e+01 : f32
    %5 = vector.broadcast %cst : f32 to vector<100x1xf32>
    %6 = arith.maximumf %5, %4 : vector<100x1xf32>
    %7 = vector.broadcast %cst_4 : f32 to vector<100x1xf32>
    %8 = arith.minimumf %7, %6 : vector<100x1xf32>
    %cst_5 = arith.constant 1.000000e+00 : f32
    %9 = vector.broadcast %cst_5 : f32 to vector<100x1xf32>
    %10 = arith.subf %8, %9 : vector<100x1xf32>
    %11 = math.exp2 %10 : vector<100x1xf32>
    %cst_6 = arith.constant 1.000000e+00 : f32
    %12 = vector.broadcast %cst_6 : f32 to vector<100x1xf32>
    %13 = arith.subf %11, %12 : vector<100x1xf32>
    %cst_7 = arith.constant 0.000000e+00 : f32
    %14 = vector.broadcast %cst_7 : f32 to vector<100x1xf32>
    %15 = arith.subf %14, %11 : vector<100x1xf32>
    %cst_8 = arith.constant 1.000000e+00 : f32
    %16 = vector.broadcast %cst_8 : f32 to vector<100x1xf32>
    %17 = arith.divf %16, %3 : vector<100x1xf32>
    %18 = vector.broadcast %17 : vector<100x1xf32> to vector<100x128xf32>
    %19 = arith.mulf %0, %18 : vector<100x128xf32>
    %20 = math.roundeven %19 : vector<100x128xf32>
    %21 = vector.broadcast %15 : vector<100x1xf32> to vector<100x128xf32>
    %22 = arith.maximumf %21, %20 : vector<100x128xf32>
    %23 = vector.broadcast %13 : vector<100x1xf32> to vector<100x128xf32>
    %24 = arith.minimumf %23, %22 : vector<100x128xf32>
    %25 = vector.broadcast %3 : vector<100x1xf32> to vector<100x128xf32>
    %26 = arith.mulf %24, %25 : vector<100x128xf32>
    %c0_9 = arith.constant 0 : index
    %c0_10 = arith.constant 0 : index
    %27 = vector.load %arg4[%c0_9, %c0_10] : memref<100x128xf32, #tpu.memory_space<vmem>>, vector<100x128xf32>
    tpu.vector_store %arg4[%c0_9, %c0_10], %26 {strides = array<i32>} : memref<100x128xf32, #tpu.memory_space<vmem>>, vector<100x128xf32>,
    return
  }
  func.func @transform_0(%arg0: i32, %arg1: i32) -> (i32, i32) {
    %c0_i32 = arith.constant 0 : i32
    return %arg0, %arg1 : i32, i32
  }
  func.func @transform_1(%arg0: i32, %arg1: i32) -> (i32, i32) {
    %c0_i32 = arith.constant 0 : i32
    %c0_i32_0 = arith.constant 0 : i32
    return %arg0, %c0_i32 : i32, i32
  }
  func.func @transform_2(%arg0: i32, %arg1: i32) -> (i32, i32) {
    %c0_i32 = arith.constant 0 : i32
    return %arg0, %arg1 : i32, i32
  }
}

</mosaic_0001>

<bundles_post_ra>
// kernel: tpu_custom_call.1
= control target key start
LH: loop header
LB: loop body
LE: loop exit
PB: predicated region body
PF: predicated region fallthrough
CT: control target
= control target key end

     0   :  { %v660_v2 = vmov 0   ;;  %v661_v5 = vmov 1   ;;  %s934_s0 = inlined_call_operand.vmem [shape: f32[100,128], index: 0, kind: input, shape index: {}]   ;;  %s935_s1 = inlined_call_operand.vmem [shape: f32[100,2], index: 1, kind: input, shape index: {}]   ;;  %s936_s2 = inlined_call_operand.hbm [shape: f32[100,128], index: 2, kind: output, shape index: {}]  }
   0x1   :  { %v683_v0 = vld [vmem:[%s935_s1 + $0x10] sm:$0xff]  ;;  %v688_v1 = vld [vmem:[%s935_s1 + $0x18] sm:$0xff]  ;;  %579 = vset.pattern.permute.xlu1 %v660_v2  ;;  %581 = vset.pattern.permute.xlu0 %v661_v5  ;;  %v697_v6 = vld [vmem:[%s935_s1 + $0x28] sm:$0xff] }
   0x2   :  { %v40_v3 = vand.u32 2147483647, %v683_v0  ;;  %v41_v4 = vand.u32 2147483647, %v688_v1  ;;  %v702_v7 = vld [vmem:[%s935_s1 + $0x8] sm:$0xff]  ;;  %v707_v8 = vld [vmem:[%s935_s1 + $0x20] sm:$0xff]  ;;  %v550_v20 = vround.rtne.f32 %v683_v0 }
   0x3   :  { %v549_v9 = vround.rtne.f32 %v702_v7  ;;  %v715_v10 = vld [vmem:[%s935_s1 + $0x30] sm:$0xff]  ;;  %v552_v11 = vround.rtne.f32 %v707_v8  ;;  %v43_v12 = vand.u32 2147483647, %v697_v6  ;;  %v724_v14 = vld [vmem:[%s935_s1 + $0x40] sm:$0xff]  ;;  %v729_v15 = vld [vmem:[%s935_s1 + $0x38] sm:$0xff] }
   0x4   :  { %584 = vrcp.f32 %v40_v3  ;;  %v554_v17 = vround.rtne.f32 %v715_v10  ;;  %v735_v18 = vld [vmem:[%s935_s1 + $0x50] sm:$0xff]  ;;  %v556_v23 = vround.rtne.f32 %v724_v14  ;;  %v742_v24 = vld [vmem:[%s935_s1] sm:$0xff] }
   0x5   :  { %586 = vrcp.f32 %v41_v4  ;;  %v65_v13 = vmax.f32 %v549_v9, 1.0  ;;  %v68_v16 = vmax.f32 %v552_v11, 1.0 }
   0x6   :  { %v70_v22 = vmax.f32 %v554_v17, 1.0 }
   0x7   :  { %v78_v19 = vmin.f32 %v65_v13, 32.0  ;;  %v81_v21 = vmin.f32 %v68_v16, 32.0 }
   0x8   :  { %7 = vsyncpa [#allocation3], 0  ;;  %588 = vrcp.f32 %v43_v12  ;;  %v45_v26 = vand.u32 2147483647, %v729_v15  ;;  %v558_v27 = vround.rtne.f32 %v735_v18  ;;  %v751_v29 = vld [vmem:[%s935_s1 + $0x48] sm:$0xff]  ;;  %v83_v30 = vmin.f32 %v70_v22, 32.0 }
   0x9   :  { %v523_v25 = vadd.f32 -1.0, %v78_v19  ;;  %v526_v28 = vadd.f32 -1.0, %v81_v21  ;;  %v72_v31 = vmax.f32 %v556_v23, 1.0  ;;  %v756_v32 = vld [vmem:[%s935_s1 + $0x60] sm:$0xf]  ;;  %v548_v34 = vround.rtne.f32 %v742_v24  ;;  %v767_v43 = vld [vmem:[%s935_s1 + $0x58] sm:$0xff] }
   0xa   :  { %v74_v33 = vmax.f32 %v558_v27, 1.0  ;;  %v551_v35 = vround.rtne.f32 %v688_v1  ;;  %v66_v36 = vmax.f32 %v550_v20, 1.0  ;;  %v528_v37 = vadd.f32 -1.0, %v83_v30 }
   0xb   :  { %590 = vpow2.f32 %v523_v25  ;;  %v85_v38 = vmin.f32 %v72_v31, 32.0  ;;  %v47_v40 = vand.u32 2147483647, %v751_v29  ;;  %v64_v41 = vmax.f32 %v548_v34, 1.0 }
   0xc   :  { %592 = vpow2.f32 %v526_v28  ;;  %v560_v42 = vround.rtne.f32 %v756_v32  ;;  %v87_v44 = vmin.f32 %v74_v33, 32.0  ;;  %v79_v49 = vmin.f32 %v66_v36, 32.0 }
   0xd   :  { %594 = vrcp.f32 %v45_v26  ;;  %v530_v46 = vadd.f32 -1.0, %v85_v38  ;;  %v77_v47 = vmin.f32 %v64_v41, 32.0  ;;  %v49_v50 = vand.u32 2147483647, %v767_v43 }
   0xe   :  { %v585_v39 = vpop.eup %584  ;;  %596 = vpow2.f32 %v528_v37  ;;  %v76_v48 = vmax.f32 %v560_v42, 1.0  ;;  %v67_v51 = vmax.f32 %v551_v35, 1.0  ;;  %v553_v53 = vround.rtne.f32 %v697_v6 }
   0xf   :  { %180 = vperm.xlu1 %579, %v585_v39   ;;  %v587_v45 = vpop.eup %586  ;;  %598 = vrcp.f32 %v47_v40  ;;  %v522_v52 = vadd.f32 -1.0, %v77_v47  ;;  %v532_v55 = vadd.f32 -1.0, %v87_v44  ;;  %v524_v58 = vadd.f32 -1.0, %v79_v49 }
  0x10   :  { %600 = vpow2.f32 %v530_v46  ;;  %v89_v56 = vmin.f32 %v76_v48, 32.0  ;;  %v80_v59 = vmin.f32 %v67_v51, 32.0  ;;  %v69_v62 = vmax.f32 %v553_v53, 1.0 }
  0x11   :  { %602 = vrcp.f32 %v49_v50  ;;  %v555_v63 = vround.rtne.f32 %v729_v15  ;;  %v557_v17 = vround.rtne.f32 %v751_v29  ;;  %v559_v31 = vround.rtne.f32 %v767_v43 }
  0x12   :  { %v589_v54 = vpop.eup %588  ;;  %604 = vpow2.f32 %v522_v52  ;;  %v534_v11 = vadd.f32 -1.0, %v89_v56  ;;  %v525_v19 = vadd.f32 -1.0, %v80_v59  ;;  %v82_v20 = vmin.f32 %v69_v62, 32.0 }
  0x13   :  { %185 = vperm.xlu1 %579, %v587_v45   ;;  %606 = vpow2.f32 %v532_v55  ;;  %v71_v21 = vmax.f32 %v555_v63, 1.0  ;;  %v73_v27 = vmax.f32 %v557_v17, 1.0  ;;  %v75_v39 = vmax.f32 %v559_v31, 1.0 }
  0x14   :  { %608 = vpow2.f32 %v524_v58  ;;  %v527_v28 = vadd.f32 -1.0, %v82_v20  ;;  %v39_v17 = vand.u32 2147483647, %v702_v7  ;;  %v48_v31 = vand.u32 2147483647, %v735_v18 }
  0x15   :  { %v591_v57 = vpop.eup %590  ;;  %610 = vpow2.f32 %v534_v11  ;;  %v84_v30 = vmin.f32 %v71_v21, 32.0  ;;  %v86_v38 = vmin.f32 %v73_v27, 32.0  ;;  %v88_v47 = vmin.f32 %v75_v39, 32.0 }
  0x16   :  { %v775_v60 = vpop.eup %592  ;;  %v130_v61 = vsub.f32 0.0, %v591_v57  ;;  %612 = vpow2.f32 %v525_v19  ;;  %v536_v55 = vadd.f32 -1.0, %v591_v57  ;;  %v38_v11 = vand.u32 2147483647, %v742_v24 }
  0x17   :  { %195 = vperm.xlu1 %579, %v589_v54   ;;  %v595_v9 = vpop.eup %594  ;;  %v133_v13 = vsub.f32 0.0, %v775_v60  ;;  %614 = vpow2.f32 %v527_v28  ;;  %v529_v37 = vadd.f32 -1.0, %v84_v30  ;;  %v531_v46 = vadd.f32 -1.0, %v86_v38 }
  0x18   :  { %266 = vperm.xlu0 %581, %v130_v61   ;;  %v779_v16 = vpop.eup %596  ;;  %v533_v52 = vadd.f32 -1.0, %v88_v47  ;;  %v42_v21 = vand.u32 2147483647, %v707_v8  ;;  %v44_v24 = vand.u32 2147483647, %v715_v10  ;;  %v539_v7 = vadd.f32 -1.0, %v775_v60 }
  0x19   :  { %v599_v22 = vpop.eup %598  ;;  %v135_v23 = vsub.f32 0.0, %v779_v16  ;;  %616 = vpow2.f32 %v529_v37  ;;  %v46_v28 = vand.u32 2147483647, %v724_v14  ;;  %v541_v8 = vadd.f32 -1.0, %v779_v16 }
  0x1a   :  { %v783_v25 = vpop.eup %600  ;;  %618 = vpow2.f32 %v531_v46  ;;  %v50_v60 = vand.u32 2147483647, %v756_v32 }
  0x1b   :  { %205 = vperm.xlu1 %579, %v595_v9   ;;  %v603_v33 = vpop.eup %602  ;;  %v137_v35 = vsub.f32 0.0, %v783_v25  ;;  %620 = vpow2.f32 %v533_v52 }
  0x1c   :  { %281 = vperm.xlu0 %581, %v133_v13   ;;  %v605_v34 = vpop.eup %604  ;;  %622 = vrcp.f32 %v38_v11 }
  0x1d   :  { %v787_v36 = vpop.eup %606  ;;  %v129_v41 = vsub.f32 0.0, %v605_v34  ;;  %v535_v20 = vadd.f32 -1.0, %v605_v34  ;;  %624 = vrcp.f32 %v39_v17 }
  0x1e   :  { %v609_v42 = vpop.eup %608  ;;  %v139_v44 = vsub.f32 0.0, %v787_v36  ;;  %626 = vrcp.f32 %v42_v21  ;;  %v545_v34 = vadd.f32 -1.0, %v787_v36 }
  0x1f   :  { %215 = vperm.xlu1 %579, %v599_v22   ;;  %v790_v45 = vpop.eup %610  ;;  %v131_v48 = vsub.f32 0.0, %v609_v42  ;;  %628 = vrcp.f32 %v44_v24 }
  0x20   :  { %291 = vperm.xlu0 %581, %v135_v23   ;;  %v613_v49 = vpop.eup %612  ;;  %v141_v51 = vsub.f32 0.0, %v790_v45  ;;  %v537_v23 = vadd.f32 -1.0, %v609_v42  ;;  %630 = vrcp.f32 %v46_v28  ;;  %v547_v16 = vadd.f32 -1.0, %v790_v45 }
  0x21   :  { %v132_v53 = vsub.f32 0.0, %v613_v49  ;;  %v615_v54 = vpop.eup %614  ;;  %v538_v58 = vadd.f32 -1.0, %v613_v49  ;;  %632 = vrcp.f32 %v48_v31 }
  0x22   :  { %v134_v56 = vsub.f32 0.0, %v615_v54  ;;  %v540_v62 = vadd.f32 -1.0, %v615_v54  ;;  %634 = vrcp.f32 %v50_v60 }
  0x23   :  { %225 = vperm.xlu1 %579, %v603_v33   ;;  %v543_v33 = vadd.f32 -1.0, %v783_v25 }
  0x24   :  { %301 = vperm.xlu0 %581, %v137_v35  }
  0x27   :  { %580 = vset.pattern.permute.xlu1 %v661_v5  ;;  %v617_v5 = vpop.eup %616 }
  0x28   :  { %261 = vperm.xlu1 %580, %v129_v41   ;;  %311 = vperm.xlu0 %581, %v139_v44   ;;  %v136_v59 = vsub.f32 0.0, %v617_v5  ;;  %v619_v61 = vpop.eup %618  ;;  %v542_v13 = vadd.f32 -1.0, %v617_v5 }
  0x29   :  { %v138_v63 = vsub.f32 0.0, %v619_v61  ;;  %v621_v9 = vpop.eup %620  ;;  %v544_v19 = vadd.f32 -1.0, %v619_v61  ;;  %v12_v61 = vld [vmem:[%s934_s0] sm:$0xff] }
  0x2a   :  { %v140_v57 = vsub.f32 0.0, %v621_v9  ;;  %v546_v22 = vadd.f32 -1.0, %v621_v9  ;;  %v623_v27 = vpop.eup %622 }
  0x2b   :  { %v625_v30 = vpop.eup %624 }
  0x2c   :  { %271 = vperm.xlu1 %580, %v131_v48   ;;  %321 = vperm.xlu0 %581, %v141_v51   ;;  %v627_v10 = vpop.eup %626 }
  0x2d   :  { %v629_v14 = vpop.eup %628 }
  0x2e   :  { %v631_v35 = vpop.eup %630 }
  0x2f   :  { %v633_v18 = vpop.eup %632 }
  0x30   :  { %276 = vperm.xlu1 %580, %v132_v53   ;;  %344 = vperm.xlu0 %581, %v536_v55   ;;  %v635_v37 = vpop.eup %634 }
  0x34   :  { %286 = vperm.xlu1 %580, %v134_v56   ;;  %354 = vperm.xlu0 %581, %v538_v58   ;;  %v13_v56 = vld [vmem:[%s934_s0 + $0x8] sm:$0xff] }
  0x38   :  { %296 = vperm.xlu1 %580, %v136_v59   ;;  %364 = vperm.xlu0 %581, %v540_v62  }
  0x3c   :  { %306 = vperm.xlu1 %580, %v138_v63   ;;  %374 = vperm.xlu0 %581, %v542_v13  }
  0x40   :  { %316 = vperm.xlu1 %580, %v140_v57   ;;  %384 = vperm.xlu0 %581, %v544_v19   ;;  %v16_v57 = vld [vmem:[%s934_s0 + $0x20] sm:$0xff] }
  0x44   :  { %339 = vperm.xlu1 %580, %v535_v20   ;;  %394 = vperm.xlu0 %581, %v546_v22   ;;  %v15_v20 = vld [vmem:[%s934_s0 + $0x18] sm:$0xff] }
  0x48   :  { %349 = vperm.xlu1 %580, %v537_v23   ;;  %582 = vset.pattern.permute.xlu0 %v660_v2 }
  0x49   :  { %170 = vperm.xlu0 %582, %v623_v27   ;;  %v18_v27 = vld [vmem:[%s934_s0 + $0x30] sm:$0xff] }
  0x4c   :  { %359 = vperm.xlu1 %580, %v539_v7  }
  0x4d   :  { %175 = vperm.xlu0 %582, %v625_v30  }
  0x50   :  { %369 = vperm.xlu1 %580, %v541_v8   ;;  %v17_v8 = vld [vmem:[%s934_s0 + $0x28] sm:$0xff] }
  0x51   :  { %190 = vperm.xlu0 %582, %v627_v10  }
  0x54   :  { %379 = vperm.xlu1 %580, %v543_v33  }
  0x55   :  { %200 = vperm.xlu0 %582, %v629_v14   ;;  %v20_v14 = vld [vmem:[%s934_s0 + $0x40] sm:$0xff] }
  0x58   :  { %389 = vperm.xlu1 %580, %v545_v34  }
  0x59   :  { %210 = vperm.xlu0 %582, %v631_v35  }
  0x5c   :  { %399 = vperm.xlu1 %580, %v547_v16  }
  0x5d   :  { %220 = vperm.xlu0 %582, %v633_v18  }
  0x60   :  { %583 = vset.pattern.permute.xlu1 %v660_v2 }
  0x61   :  { %422 = vperm.xlu1 %583, %v39_v17   ;;  %230 = vperm.xlu0 %582, %v635_v37  }
  0x65   :  { %427 = vperm.xlu1 %583, %v40_v3   ;;  %417 = vperm.xlu0 %582, %v38_v11   ;;  %v14_v11 = vld [vmem:[%s934_s0 + $0x10] sm:$0xff] }
  0x69   :  { %437 = vperm.xlu1 %583, %v42_v21   ;;  %432 = vperm.xlu0 %582, %v41_v4  }
  0x6d   :  { %447 = vperm.xlu1 %583, %v44_v24   ;;  %442 = vperm.xlu0 %582, %v43_v12  }
  0x71   :  { %457 = vperm.xlu1 %583, %v46_v28   ;;  %452 = vperm.xlu0 %582, %v45_v26  }
  0x75   :  { %467 = vperm.xlu1 %583, %v48_v31   ;;  %462 = vperm.xlu0 %582, %v47_v40  }
  0x79   :  { %477 = vperm.xlu1 %583, %v50_v60   ;;  %472 = vperm.xlu0 %582, %v49_v50  }
  0x8e   :  { %v181_v0 = vpop.permute.xlu1 %180 }
  0x8f   :  { %v235_v19 = vmul.f32 %v181_v0, %v14_v11 }
  0x91   :  { %v563_v30 = vround.rtne.f32 %v235_v19 }
  0x92   :  { %v186_v2 = vpop.permute.xlu1 %185 }
  0x93   :  { %v236_v28 = vmul.f32 %v186_v2, %v15_v20  ;;  %v19_v2 = vld [vmem:[%s934_s0 + $0x38] sm:$0xff] }
  0x95   :  { %v564_v37 = vround.rtne.f32 %v236_v28 }
  0x96   :  { %v196_v1 = vpop.permute.xlu1 %195 }
  0x97   :  { %v267_v3 = vpop.permute.xlu0 %266  ;;  %v238_v0 = vmul.f32 %v196_v1, %v17_v8 }
  0x9a   :  { %v820_v4 = vpop.permute.xlu1 %205 }
  0x9b   :  { %v282_v6 = vpop.permute.xlu0 %281  ;;  %v240_v1 = vmul.f32 %v820_v4, %v19_v2  ;;  %v24_v4 = vld [vmem:[%s934_s0 + $0x60] sm:$0xf] }
  0x9e   :  { %v822_v12 = vpop.permute.xlu1 %215 }
  0x9f   :  { %v824_v32 = vpop.permute.xlu0 %291 }
  0xa2   :  { %v826_v15 = vpop.permute.xlu1 %225 }
  0xa3   :  { %v828_v26 = vpop.permute.xlu0 %301 }
  0xa7   :  { %v262_v29 = vpop.permute.xlu1 %261  ;;  %v830_v40 = vpop.permute.xlu0 %311 }
  0xab   :  { %v272_v43 = vpop.permute.xlu1 %271  ;;  %v832_v50 = vpop.permute.xlu0 %321 }
  0xac   :  { %v326_v35 = vmax.f32 %v272_v43, %v563_v30 }
  0xaf   :  { %v277_v25 = vpop.permute.xlu1 %276  ;;  %v345_v36 = vpop.permute.xlu0 %344 }
  0xb3   :  { %v834_v38 = vpop.permute.xlu1 %286  ;;  %v836_v39 = vpop.permute.xlu0 %354 }
  0xb7   :  { %v838_v41 = vpop.permute.xlu1 %296  ;;  %v840_v42 = vpop.permute.xlu0 %364 }
  0xbb   :  { %v842_v44 = vpop.permute.xlu1 %306  ;;  %v844_v45 = vpop.permute.xlu0 %374 }
  0xbf   :  { %v846_v46 = vpop.permute.xlu1 %316  ;;  %v848_v47 = vpop.permute.xlu0 %384 }
  0xc3   :  { %v340_v48 = vpop.permute.xlu1 %339  ;;  %v850_v49 = vpop.permute.xlu0 %394 }
  0xc7   :  { %v350_v51 = vpop.permute.xlu1 %349 }
  0xc8   :  { %v171_v52 = vpop.permute.xlu0 %170 }
  0xc9   :  { %v233_v13 = vmul.f32 %v171_v52, %v12_v61 }
  0xcb   :  { %v852_v53 = vpop.permute.xlu1 %359  ;;  %v561_v24 = vround.rtne.f32 %v233_v13 }
  0xcc   :  { %v176_v54 = vpop.permute.xlu0 %175 }
  0xcd   :  { %v234_v58 = vmul.f32 %v176_v54, %v13_v56  ;;  %v324_v60 = vmax.f32 %v262_v29, %v561_v24  ;;  %v327_v29 = vmax.f32 %v277_v25, %v564_v37 }
  0xcf   :  { %v854_v55 = vpop.permute.xlu1 %369  ;;  %v562_v63 = vround.rtne.f32 %v234_v58 }
  0xd0   :  { %v191_v5 = vpop.permute.xlu0 %190 }
  0xd1   :  { %v325_v21 = vmax.f32 %v267_v3, %v562_v63  ;;  %v237_v22 = vmul.f32 %v191_v5, %v16_v57  ;;  %v404_v3 = vmin.f32 %v350_v51, %v326_v35  ;;  %v402_v5 = vmin.f32 %v340_v48, %v324_v60 }
  0xd2   :  { %v405_v48 = vmin.f32 %v836_v39, %v327_v29 }
  0xd3   :  { %v859_v59 = vpop.permute.xlu1 %379  ;;  %v565_v31 = vround.rtne.f32 %v237_v22  ;;  %v403_v33 = vmin.f32 %v345_v36, %v325_v21  ;;  %v22_v36 = vld [vmem:[%s934_s0 + $0x50] sm:$0xff]  ;;  %v568_v21 = vround.rtne.f32 %v240_v1 }
  0xd4   :  { %v201_v62 = vpop.permute.xlu0 %200 }
  0xd5   :  { %v239_v10 = vmul.f32 %v201_v62, %v18_v27  ;;  %v328_v52 = vmax.f32 %v282_v6, %v565_v31  ;;  %v566_v62 = vround.rtne.f32 %v238_v0  ;;  %v21_v6 = vld [vmem:[%s934_s0 + $0x48] sm:$0xff]  ;;  %v331_v28 = vmax.f32 %v838_v41, %v568_v21 }
  0xd7   :  { %v864_v9 = vpop.permute.xlu1 %389  ;;  %v567_v54 = vround.rtne.f32 %v239_v10  ;;  %v406_v13 = vmin.f32 %v852_v53, %v328_v52  ;;  %v329_v57 = vmax.f32 %v834_v38, %v566_v62  ;;  %v23_v53 = vld [vmem:[%s934_s0 + $0x58] sm:$0xff]  ;;  %s662_s0 = smov [#allocation2]  }
  0xd8   :  { %v211_v17 = vpop.permute.xlu0 %210  ;;  %v244_v10 = vmul.f32 %v826_v15, %v23_v53  ;;  %s511_s4 = sshll.u32 %s662_s0, 4  ;;  %s512_s4 = int_to_ptr.vmem [resolvable:$true] %s511_s4 }
  0xd9   :  { %v241_v56 = vmul.f32 %v211_v17, %v20_v14  ;;  %v330_v51 = vmax.f32 %v824_v32, %v567_v54  ;;  %v242_v32 = vmul.f32 %v822_v12, %v21_v6  ;;  %s636_s5 = scalar_lea.vmem %s512_s4, 1664  ;;  %p641_p1 = scmp.lt.s32.totalorder %s512_s4, %s512_s4 }
  0xda   :  { %p637_p0 = scmp.ne.s32.totalorder %s512_s4, %s636_s5  ;;  %p642_p2 = scmp.lt.s32.totalorder %s636_s5, %s636_s5 }
  0xdb   :  { %v875_v23 = vpop.permute.xlu1 %399  ;;  %v569_v11 = vround.rtne.f32 %v241_v56  ;;  %v408_v27 = vmin.f32 %v854_v55, %v330_v51  ;;  %v570_v31 = vround.rtne.f32 %v242_v32  ;;  %v409_v55 = vmin.f32 %v844_v45, %v331_v28 }
  0xdc   :  { %v221_v7 = vpop.permute.xlu0 %220  ;;  %p643_p3 = por %p642_p2, %p641_p1 }
  0xdd   :  { %v243_v25 = vmul.f32 %v221_v7, %v22_v36  ;;  %v332_v39 = vmax.f32 %v828_v26, %v569_v11  ;;  %v407_v7 = vmin.f32 %v840_v42, %v329_v57  ;;  %v333_v42 = vmax.f32 %v842_v44, %v570_v31 }
  0xde   :  { %p644_p4 = pnand %p643_p3, %p637_p0 }
  0xdf   :  { %v571_v24 = vround.rtne.f32 %v243_v25  ;;  %v410_v14 = vmin.f32 %v859_v59, %v332_v39 }
  0xe0   :  { %v423_v34 = vpop.permute.xlu1 %422  ;;  %v231_v16 = vpop.permute.xlu0 %230 }
  0xe1   :  { %v481_v18 = vmul.f32 %v423_v34, %v403_v33  ;;  %v245_v38 = vmul.f32 %v231_v16, %v24_v4  ;;  %v334_v60 = vmax.f32 %v830_v40, %v571_v24  ;;  %v572_v16 = vround.rtne.f32 %v244_v10 }
  0xe2   :  { %v411_v40 = vmin.f32 %v848_v47, %v333_v42 }
  0xe3   :  { %494 = vst [vmem:[#allocation2 + $0x8] sm:$0xff] %v481_v18  ;;  %v573_v26 = vround.rtne.f32 %v245_v38  ;;  %v412_v15 = vmin.f32 %v864_v9, %v334_v60  ;;  %v335_v0 = vmax.f32 %v846_v46, %v572_v16 }
  0xe4   :  { %v428_v43 = vpop.permute.xlu1 %427  ;;  %v418_v58 = vpop.permute.xlu0 %417 }
  0xe5   :  { %v482_v61 = vmul.f32 %v428_v43, %v404_v3  ;;  %v480_v63 = vmul.f32 %v418_v58, %v402_v5  ;;  %v336_v37 = vmax.f32 %v832_v50, %v573_v26  ;;  %v413_v52 = vmin.f32 %v850_v49, %v335_v0 }
  0xe7   :  { %495 = vst [vmem:[#allocation2 + $0x10] sm:$0xff] %v482_v61  ;;  %493 = vst [vmem:[#allocation2] sm:$0xff] %v480_v63  ;;  %v414_v3 = vmin.f32 %v875_v23, %v336_v37 }
  0xe8   :  { %v438_v17 = vpop.permute.xlu1 %437  ;;  %v433_v19 = vpop.permute.xlu0 %432 }
  0xe9   :  { %v484_v20 = vmul.f32 %v438_v17, %v406_v13  ;;  %v483_v22 = vmul.f32 %v433_v19, %v405_v48 }
  0xeb   :  { %497 = vst [vmem:[#allocation2 + $0x20] sm:$0xff] %v484_v20  ;;  %496 = vst [vmem:[#allocation2 + $0x18] sm:$0xff] %v483_v22 }
  0xec   :  { %v448_v30 = vpop.permute.xlu1 %447  ;;  %v443_v8 = vpop.permute.xlu0 %442 }
  0xed   :  { %v486_v12 = vmul.f32 %v448_v30, %v408_v27  ;;  %v485_v33 = vmul.f32 %v443_v8, %v407_v7 }
  0xef   :  { %499 = vst [vmem:[#allocation2 + $0x30] sm:$0xff] %v486_v12  ;;  %498 = vst [vmem:[#allocation2 + $0x28] sm:$0xff] %v485_v33 }
  0xf0   :  { %v458_v41 = vpop.permute.xlu1 %457  ;;  %v453_v34 = vpop.permute.xlu0 %452 }
  0xf1   :  { %v488_v35 = vmul.f32 %v458_v41, %v410_v14  ;;  %v487_v18 = vmul.f32 %v453_v34, %v409_v55 }
  0xf3   :  { %501 = vst [vmem:[#allocation2 + $0x40] sm:$0xff] %v488_v35  ;;  %500 = vst [vmem:[#allocation2 + $0x38] sm:$0xff] %v487_v18 }
  0xf4   :  { %v468_v59 = vpop.permute.xlu1 %467  ;;  %v463_v45 = vpop.permute.xlu0 %462 }
  0xf5   :  { %v490_v2 = vmul.f32 %v468_v59, %v412_v15  ;;  %v489_v44 = vmul.f32 %v463_v45, %v411_v40 }
  0xf7   :  { %503 = vst [vmem:[#allocation2 + $0x50] sm:$0xff] %v490_v2  ;;  %502 = vst [vmem:[#allocation2 + $0x48] sm:$0xff] %v489_v44 }
  0xf8   :  { %v478_v50 = vpop.permute.xlu1 %477  ;;  %v473_v54 = vpop.permute.xlu0 %472 }
  0xf9   :  { %v492_v9 = vmul.f32 %v478_v50, %v414_v3  ;;  %v491_v56 = vmul.f32 %v473_v54, %v413_v52 }
  0xfb   :  { %505 = vst [vmem:[#allocation2 + $0x60] sm:$0xf] %v492_v9  ;;  %504 = vst [vmem:[#allocation2 + $0x58] sm:$0xff] %v491_v56 }
  0xfc   :  { %647 = shalt.err (!%p644_p4)
}
  0xfd   :  { %s648_s7 = scalar_lea.hbm %s936_s2, 1664 }
  0xfe   :  { %p649_p5 = scmp.ne.s32.totalorder %s936_s2, %s648_s7  ;;  %p652_p6 = scmp.lt.u32.totalorder %s648_s7, %s936_s2 }
 0x100   :  { %p654_p7 = pnand %p652_p6, %p649_p5 }
 0x102   :  { %657 = shalt.err (!%p654_p7)
}
 0x103   :  { %s663_s12 = smov 128   ;;  %s664_s13 = smov 8  }
 0x104   :  { %517 = dma.vmem_to_hbm [thread:$0]  %s512_s4, 1664, %s936_s2, [#allocation3], %s663_s12, %s663_s12, %s664_s13  }
 0x105   :  { %658 = dma.done.wait [#allocation3], 1664  }
 0x106   :  { %659 = vsyncadd [#allocation3], 4294965632 }
 0x107   :  { %521 = vsyncpa [#allocation3], 1 }

</bundles_post_ra>
